<compile_context>
chip_gen: v5e
topology: v5e:2x2
jax: 0.10.0
libtpu: 0.0.40
codegen_flags: <defaults>
</compile_context>

<pallas_src>
import functools

import numpy as np
import jax
import jax.numpy as jnp
from jax.experimental import pallas as pl
from jax.experimental.pallas import tpu as pltpu

# _get_format_params(ElemFormat.fp8_e4m3): ebits=4, mbits=5, emax=8, max_norm=448.0
EBITS = 4
MBITS = 5.0
EMAX = 8.0
MAX_NORM = 448.0
# e = log_scales - (mbits-2) - emax = log_scales - 11 with
# log_scales = max(floor(log2|x_|) + 8, 1)  =>  e = max(biased_exp(x_) - 130, -10)
_E_BIAS_SHIFT = 130          # 127 + (mbits - 2) == 127 + 3
_E_MIN = -10


def _bits_i32(v, in_kernel):
    return pltpu.bitcast(v, jnp.int32) if in_kernel else jax.lax.bitcast_convert_type(v, jnp.int32)


def _bits_f32(v, in_kernel):
    return pltpu.bitcast(v, jnp.float32) if in_kernel else jax.lax.bitcast_convert_type(v, jnp.float32)


def _fake_quant(x, amax, *, exact, in_kernel):
    """fp8_e4m3 fake-quantize x (f32) given per-group abs-max `amax` (broadcastable).

    Mirrors FPQuantizer.fake_quantize with zeros == 0.  All-zero groups return 0
    (the torch reference produces 0/0 = NaN for that degenerate case); NaN/Inf
    inputs propagate NaN like the reference.  Subnormal amax flushes like XLA.
    """
    if exact:
        # torch op order: scales = amax/448 ; x_ = clip(x / scales, ...)
        scales = amax / MAX_NORM
        safe = jnp.where(amax > 0.0, scales, 1.0)
        x_ = x / safe
    else:
        # fast path: one divide per group value + one multiply per element
        # (<=1 ulp from the torch order; use exact=True for strict bit parity).
        safe = jnp.where(amax > 0.0, amax, 1.0)
        x_ = x * (MAX_NORM / safe)
        scales = amax * (1.0 / MAX_NORM)
    x_ = jnp.clip(x_, -MAX_NORM, MAX_NORM)

    # floor(log2|x_|) from the f32 exponent field (exact, no EUP log2; the `& 0xFF`
    # also makes a separate abs unnecessary).  Zeros / subnormals hit the same -10
    # clamp that the reference's .clamp(min=1.0) produces.
    bexp = (_bits_i32(x_, in_kernel) >> 23) & 0xFF
    e_int = jnp.maximum(bexp - _E_BIAS_SHIFT, _E_MIN)           # in [-10, 5]
    inv_bits = (e_int + 127) << 23
    inv_scales = _bits_f32(inv_bits, in_kernel)                 # 2**e   (exact)
    rcp_scales = _bits_f32((254 << 23) - inv_bits, in_kernel)   # 2**-e  (exact)

    # round(x_ * 2**-e) * 2**e is bit-identical to round(x_ / 2**e) * 2**e.
    q = jnp.round(x_ * rcp_scales) * inv_scales
    return q * scales


# ----------------------------------------------------------------------------- kernels
def _fpq_rowwise_kernel(x_ref, o_ref, *, exact):
    """Generic path: one group per row, block = (tm, d)."""
    x = x_ref[...].astype(jnp.float32)
    amax = jnp.max(jnp.abs(x), axis=-1, keepdims=True)          # (tm, 1)
    o_ref[...] = _fake_quant(x, amax, exact=exact, in_kernel=True).astype(o_ref.dtype)


def _fpq_lane_dense_kernel(x_ref, o_ref, *, d, exact):
    """Lane-dense path for d < 128 with 128 % d == 0: each 128-lane row holds
    128//d whole groups, so every load/store and per-element op is fully dense."""
    x = x_ref[...].astype(jnp.float32)                           # (tm, 128)
    a = jnp.abs(x)
    tm = x.shape[0]
    g = 128 // d
    lane = jax.lax.broadcasted_iota(jnp.int32, (tm, 128), 1)
    seg = lane >> (d.bit_length() - 1)                           # lane // d (d is 2**k)
    amax = jnp.zeros_like(a)
    # Static unroll over the g groups per lane-row: narrow slice reduce + select-merge.
    # TODO(synk): a strided pltpu.roll tree (XLU slot) could compute this segmented
    # amax in ~log2(d) steps; kept as plain slices/reduces for lowering robustness.
    for k in range(g):
        mk = jnp.max(a[:, k * d:(k + 1) * d], axis=-1, keepdims=True)   # (tm, 1)
        amax = jnp.where(seg == k, mk, amax)
    o_ref[...] = _fake_quant(x, amax, exact=exact, in_kernel=True).astype(o_ref.dtype)


# ----------------------------------------------------------------------------- tiling
def _tpu_caps():
    """(per-core VMEM bytes, #TensorCores sharing the grid) with safe fallbacks."""
    vmem_bytes = None
    try:
        vmem_bytes = int(pltpu.get_tpu_info().vmem_capacity_bytes)
    except Exception:
        vmem_bytes = None
    if not vmem_bytes or vmem_bytes <= 0:
        vmem_bytes = 64 << 20                      # conservative (v7x per-core)
    n_cores = 1
    try:
        kind = jax.devices()[0].device_kind.lower()
        if "v7" in kind or "7x" in kind:
            n_cores = 2
    except Exception:
        pass
    if vmem_bytes <= (64 << 20):                   # v7x-class VMEM -> assume 2 TCs
        n_cores = max(n_cores, 2)
    return vmem_bytes, n_cores


def _round_up(a, m):
    return -(-a // m) * m


def _pick_tm(rows, lanes, itemsize, vmem_bytes, n_cores):
    """Row-tile: large streaming blocks sized off real VMEM; on multi-TC chips keep
    an even grid with >=2 steps per core, on single-TC chips no grid floor at all."""
    sub = 8 if itemsize >= 4 else (16 if itemsize == 2 else 32)
    if rows <= sub:
        return int(rows)                            # single full block
    # ~VMEM/16 per block: ~4 MiB on v7x (64 MiB VMEM), ~8 MiB on v5e/v6e (128 MiB).
    target = max(1 << 20, min(16 << 20, vmem_bytes // 16))
    row_bytes = max(lanes * itemsize, 1)
    tm = max(sub, (target // row_bytes) // sub * sub)
    rows_pad = _round_up(rows, sub)
    if n_cores > 1:
        min_steps = 2 * n_cores                     # >=2 pipelined steps per core
        cap = max(sub, _round_up(-(-rows_pad // min_steps), sub))
        tm = min(tm, cap)
    tm = min(tm, rows_pad)
    # Best-effort: keep the grid a multiple of the core count (avoid a 3-vs-2 split).
    grid = -(-rows // tm)
    if n_cores > 1 and grid > 1 and grid % n_cores:
        grid2 = _round_up(grid, n_cores)
        tm2 = max(sub, _round_up(-(-rows // grid2), sub))
        if (-(-rows // tm2)) % n_cores == 0:
            tm = tm2
    if tm >= rows:
        tm = rows                                   # block == full array dim
    return int(tm)


def _vmem_limit_bytes(tm, lanes, itemsize, vmem_bytes):
    """Sized from actual block bytes instead of a hard-coded constant."""
    io_block = tm * lanes * itemsize
    f32_block = tm * lanes * 4
    # double-buffered in+out blocks + headroom for f32 intermediates + compiler scratch
    need = 4 * io_block + 6 * f32_block + (4 << 20)
    return int(min(max(need, 16 << 20), (vmem_bytes * 3) // 4))


# ----------------------------------------------------------------------------- wrapper
def fp_quantize(x, *, exact=False):
    """Forward pass of FPQuantizer(fp8_e4m3, group_size=-1, zero_point=False):
    per-token (last-axis group) fake quantization.  exact=True reproduces the
    torch op order bit-for-bit; the default fast path may differ by <=1 ulp in x_."""
    orig_shape = x.shape
    d = int(orig_shape[-1])
    rows = int(np.prod(orig_shape[:-1]))
    total = rows * d
    if total == 0:
        return x
    itemsize = jnp.dtype(x.dtype).itemsize
    vmem_bytes, n_cores = _tpu_caps()
    params = lambda tm, lanes: pltpu.CompilerParams(
        dimension_semantics=("parallel",),
        vmem_limit_bytes=_vmem_limit_bytes(tm, lanes, itemsize, vmem_bytes))

    # Lane-dense path: small group width dividing 128 -> pack 128//d whole groups
    # per 128-lane row (no wrapper padding / transpose; rows are independent so the
    # masked partial last block is harmless).
    if 8 <= d < 128 and 128 % d == 0 and total % 128 == 0:
        rows2 = total // 128
        x2 = x.reshape(rows2, 128)
        tm = _pick_tm(rows2, 128, itemsize, vmem_bytes, n_cores)
        out = pl.pallas_call(
            functools.partial(_fpq_lane_dense_kernel, d=d, exact=exact),
            out_shape=jax.ShapeDtypeStruct((rows2, 128), x.dtype),
            grid=(pl.cdiv(rows2, tm),),
            in_specs=[pl.BlockSpec((tm, 128), lambda i: (i, 0))],
            out_specs=pl.BlockSpec((tm, 128), lambda i: (i, 0)),
            compiler_params=params(tm, 128),
        )(x2)
        return out.reshape(orig_shape)

    # TODO(synk): d < 8 or d not dividing 128 still runs lane-sparse below; packing
    # those widths needs a cross-lane shuffle variant.

    x2 = x.reshape(rows, d)
    # Ultra-wide rows: even a minimal (8, d) block (double-buffered + f32
    # intermediates) would not fit VMEM -> plain XLA fallback.
    # TODO(synk): two-pass running-amax kernel (grid over d) for this regime.
    min_need = 4 * 8 * d * itemsize + 6 * 8 * d * 4 + (4 << 20)
    if min_need > (vmem_bytes * 3) // 4:
        return fp_quantize_ref(x, exact=exact)

    tm = _pick_tm(rows, d, itemsize, vmem_bytes, n_cores)
    out = pl.pallas_call(
        functools.partial(_fpq_rowwise_kernel, exact=exact),
        out_shape=jax.ShapeDtypeStruct((rows, d), x.dtype),
        grid=(pl.cdiv(rows, tm),),
        in_specs=[pl.BlockSpec((tm, d), lambda i: (i, 0))],
        out_specs=pl.BlockSpec((tm, d), lambda i: (i, 0)),
        compiler_params=params(tm, d),
    )(x2)
    return out.reshape(orig_shape)


def fp_quantize_ref(x, *, exact=False):
    """Pure-JAX reference mirroring the PyTorch forward (group_size=-1, zero_point=False).
    floor(log2) is taken exactly from the exponent bits; a correctly-rounded torch.log2
    can only disagree within 1 ulp below exact powers of two (measure-zero set)."""
    xf = x.astype(jnp.float32)
    amax = jnp.max(jnp.abs(xf), axis=-1, keepdims=True)
    return _fake_quant(xf, amax, exact=exact, in_kernel=False).astype(x.dtype)


# ----------------------------------------------------------------------------- test
def _check(out, ref, what):
    out = np.asarray(out, dtype=np.float64)
    ref = np.asarray(ref, dtype=np.float64)
    close = np.isclose(out, ref, rtol=1e-6, atol=1e-6)
    frac = float(close.mean())
    # A 1-ulp divide-lowering difference can flip a rounding tie on a measure-zero
    # set of elements; everything else must match to ~f32 precision, and any flip
    # is bounded by one quantization step (<= 1/8 relative).
    assert frac >= 0.999, f"{what}: mismatch fraction {1.0 - frac:.5f}"
    np.testing.assert_allclose(out, ref, rtol=0.25, atol=1e-3, err_msg=what)


if __name__ == "__main__":
    key = jax.random.PRNGKey(0)
    k0, k1 = jax.random.split(key)

    # NCHW activation (B=2, C=4, H=16, W=16): group width W=16 < 128 -> lane-dense path.
    x = jax.random.normal(k0, (2, 4, 16, 16), dtype=jnp.float32)
    out = jax.block_until_ready(fp_quantize(x))                   # default fast path
    _check(out, fp_quantize_ref(x), "lane-dense fast")

    out_exact = jax.block_until_ready(fp_quantize(x, exact=True))
    _check(out_exact, fp_quantize_ref(x, exact=True), "lane-dense exact")

    # Wide-group input (d = 256 >= 128) exercises the generic row-wise kernel.
    y = jax.random.normal(k1, (2, 8, 256), dtype=jnp.float32)
    out_y = jax.block_until_ready(fp_quantize(y))
    _check(out_y, fp_quantize_ref(y), "row-wise fast")

    print("KERNEL_OK")
</pallas_src>

<mosaic_0001>
module attributes {stable_mosaic.version = 11 : i64} {
  func.func @_fpq_lane_dense_kernel(%arg0: i32, %arg1: memref<8x128xf32, #tpu.memory_space<vmem>>, %arg2: memref<8x128xf32, #tpu.memory_space<vmem>>) attributes {dimension_semantics = [#tpu.dimension_semantics<parallel>], iteration_bounds = array<i64: 2>, scalar_prefetch = 0 : i64, scratch_operands = 0 : i64, tpu.core_type = #tpu.core_type<tc>, window_params = [{transform_indices = @transform_0, window_bounds = array<i64: 8, 128>}, {transform_indices = @transform_1, window_bounds = array<i64: 8, 128>}]} {
    %c0 = arith.constant 0 : index
    %c0_0 = arith.constant 0 : index
    %0 = vector.load %arg1[%c0, %c0_0] : memref<8x128xf32, #tpu.memory_space<vmem>>, vector<8x128xf32>
    %1 = math.absf %0 : vector<8x128xf32>
    %2 = tpu.iota {dimensions = array<i32: 1>} : vector<8x128xi32>
    %c4_i32 = arith.constant 4 : i32
    %3 = vector.broadcast %c4_i32 : i32 to vector<8x128xi32>
    %4 = arith.shrsi %2, %3 : vector<8x128xi32>
    %cst = arith.constant 0.000000e+00 : f32
    %5 = vector.broadcast %cst : f32 to vector<8x128xf32>
    %6 = vector.extract_strided_slice %1 {offsets = [0, 0], sizes = [8, 16], strides = [1, 1]} : vector<8x128xf32> to vector<8x16xf32>
    %cst_1 = arith.constant dense<0xFF800000> : vector<8xf32>
    %7 = vector.multi_reduction <maximumf>, %6, %cst_1 [1] : vector<8x16xf32> to vector<8xf32>
    %8 = vector.shape_cast %7 : vector<8xf32> to vector<8x1xf32>
    %c0_i32 = arith.constant 0 : i32
    %9 = vector.broadcast %c0_i32 : i32 to vector<8x128xi32>
    %10 = arith.cmpi eq, %4, %9 : vector<8x128xi32>
    %11 = vector.shape_cast %8 : vector<8x1xf32> to vector<8x1xf32>
    %12 = vector.broadcast %11 : vector<8x1xf32> to vector<8x128xf32>
    %13 = arith.select %10, %12, %5 : vector<8x128xi1>, vector<8x128xf32>
    %14 = vector.extract_strided_slice %1 {offsets = [0, 16], sizes = [8, 16], strides = [1, 1]} : vector<8x128xf32> to vector<8x16xf32>
    %cst_2 = arith.constant dense<0xFF800000> : vector<8xf32>
    %15 = vector.multi_reduction <maximumf>, %14, %cst_2 [1] : vector<8x16xf32> to vector<8xf32>
    %16 = vector.shape_cast %15 : vector<8xf32> to vector<8x1xf32>
    %c1_i32 = arith.constant 1 : i32
    %17 = vector.broadcast %c1_i32 : i32 to vector<8x128xi32>
    %18 = arith.cmpi eq, %4, %17 : vector<8x128xi32>
    %19 = vector.shape_cast %16 : vector<8x1xf32> to vector<8x1xf32>
    %20 = vector.broadcast %19 : vector<8x1xf32> to vector<8x128xf32>
    %21 = arith.select %18, %20, %13 : vector<8x128xi1>, vector<8x128xf32>
    %22 = vector.extract_strided_slice %1 {offsets = [0, 32], sizes = [8, 16], strides = [1, 1]} : vector<8x128xf32> to vector<8x16xf32>
    %cst_3 = arith.constant dense<0xFF800000> : vector<8xf32>
    %23 = vector.multi_reduction <maximumf>, %22, %cst_3 [1] : vector<8x16xf32> to vector<8xf32>
    %24 = vector.shape_cast %23 : vector<8xf32> to vector<8x1xf32>
    %c2_i32 = arith.constant 2 : i32
    %25 = vector.broadcast %c2_i32 : i32 to vector<8x128xi32>
    %26 = arith.cmpi eq, %4, %25 : vector<8x128xi32>
    %27 = vector.shape_cast %24 : vector<8x1xf32> to vector<8x1xf32>
    %28 = vector.broadcast %27 : vector<8x1xf32> to vector<8x128xf32>
    %29 = arith.select %26, %28, %21 : vector<8x128xi1>, vector<8x128xf32>
    %30 = vector.extract_strided_slice %1 {offsets = [0, 48], sizes = [8, 16], strides = [1, 1]} : vector<8x128xf32> to vector<8x16xf32>
    %cst_4 = arith.constant dense<0xFF800000> : vector<8xf32>
    %31 = vector.multi_reduction <maximumf>, %30, %cst_4 [1] : vector<8x16xf32> to vector<8xf32>
    %32 = vector.shape_cast %31 : vector<8xf32> to vector<8x1xf32>
    %c3_i32 = arith.constant 3 : i32
    %33 = vector.broadcast %c3_i32 : i32 to vector<8x128xi32>
    %34 = arith.cmpi eq, %4, %33 : vector<8x128xi32>
    %35 = vector.shape_cast %32 : vector<8x1xf32> to vector<8x1xf32>
    %36 = vector.broadcast %35 : vector<8x1xf32> to vector<8x128xf32>
    %37 = arith.select %34, %36, %29 : vector<8x128xi1>, vector<8x128xf32>
    %38 = vector.extract_strided_slice %1 {offsets = [0, 64], sizes = [8, 16], strides = [1, 1]} : vector<8x128xf32> to vector<8x16xf32>
    %cst_5 = arith.constant dense<0xFF800000> : vector<8xf32>
    %39 = vector.multi_reduction <maximumf>, %38, %cst_5 [1] : vector<8x16xf32> to vector<8xf32>
    %40 = vector.shape_cast %39 : vector<8xf32> to vector<8x1xf32>
    %c4_i32_6 = arith.constant 4 : i32
    %41 = vector.broadcast %c4_i32_6 : i32 to vector<8x128xi32>
    %42 = arith.cmpi eq, %4, %41 : vector<8x128xi32>
    %43 = vector.shape_cast %40 : vector<8x1xf32> to vector<8x1xf32>
    %44 = vector.broadcast %43 : vector<8x1xf32> to vector<8x128xf32>
    %45 = arith.select %42, %44, %37 : vector<8x128xi1>, vector<8x128xf32>
    %46 = vector.extract_strided_slice %1 {offsets = [0, 80], sizes = [8, 16], strides = [1, 1]} : vector<8x128xf32> to vector<8x16xf32>
    %cst_7 = arith.constant dense<0xFF800000> : vector<8xf32>
    %47 = vector.multi_reduction <maximumf>, %46, %cst_7 [1] : vector<8x16xf32> to vector<8xf32>
    %48 = vector.shape_cast %47 : vector<8xf32> to vector<8x1xf32>
    %c5_i32 = arith.constant 5 : i32
    %49 = vector.broadcast %c5_i32 : i32 to vector<8x128xi32>
    %50 = arith.cmpi eq, %4, %49 : vector<8x128xi32>
    %51 = vector.shape_cast %48 : vector<8x1xf32> to vector<8x1xf32>
    %52 = vector.broadcast %51 : vector<8x1xf32> to vector<8x128xf32>
    %53 = arith.select %50, %52, %45 : vector<8x128xi1>, vector<8x128xf32>
    %54 = vector.extract_strided_slice %1 {offsets = [0, 96], sizes = [8, 16], strides = [1, 1]} : vector<8x128xf32> to vector<8x16xf32>
    %cst_8 = arith.constant dense<0xFF800000> : vector<8xf32>
    %55 = vector.multi_reduction <maximumf>, %54, %cst_8 [1] : vector<8x16xf32> to vector<8xf32>
    %56 = vector.shape_cast %55 : vector<8xf32> to vector<8x1xf32>
    %c6_i32 = arith.constant 6 : i32
    %57 = vector.broadcast %c6_i32 : i32 to vector<8x128xi32>
    %58 = arith.cmpi eq, %4, %57 : vector<8x128xi32>
    %59 = vector.shape_cast %56 : vector<8x1xf32> to vector<8x1xf32>
    %60 = vector.broadcast %59 : vector<8x1xf32> to vector<8x128xf32>
    %61 = arith.select %58, %60, %53 : vector<8x128xi1>, vector<8x128xf32>
    %62 = vector.extract_strided_slice %1 {offsets = [0, 112], sizes = [8, 16], strides = [1, 1]} : vector<8x128xf32> to vector<8x16xf32>
    %cst_9 = arith.constant dense<0xFF800000> : vector<8xf32>
    %63 = vector.multi_reduction <maximumf>, %62, %cst_9 [1] : vector<8x16xf32> to vector<8xf32>
    %64 = vector.shape_cast %63 : vector<8xf32> to vector<8x1xf32>
    %c7_i32 = arith.constant 7 : i32
    %65 = vector.broadcast %c7_i32 : i32 to vector<8x128xi32>
    %66 = arith.cmpi eq, %4, %65 : vector<8x128xi32>
    %67 = vector.shape_cast %64 : vector<8x1xf32> to vector<8x1xf32>
    %68 = vector.broadcast %67 : vector<8x1xf32> to vector<8x128xf32>
    %69 = arith.select %66, %68, %61 : vector<8x128xi1>, vector<8x128xf32>
    %cst_10 = arith.constant 0.000000e+00 : f32
    %70 = vector.broadcast %cst_10 : f32 to vector<8x128xf32>
    %71 = arith.cmpf ogt, %69, %70 : vector<8x128xf32>
    %cst_11 = arith.constant 1.000000e+00 : f32
    %72 = vector.broadcast %cst_11 : f32 to vector<8x128xf32>
    %73 = arith.select %71, %69, %72 : vector<8x128xi1>, vector<8x128xf32>
    %cst_12 = arith.constant 4.480000e+02 : f32
    %74 = vector.broadcast %cst_12 : f32 to vector<8x128xf32>
    %75 = arith.divf %74, %73 : vector<8x128xf32>
    %76 = arith.mulf %0, %75 : vector<8x128xf32>
    %cst_13 = arith.constant 0.00223214296 : f32
    %77 = vector.broadcast %cst_13 : f32 to vector<8x128xf32>
    %78 = arith.mulf %69, %77 : vector<8x128xf32>
    %cst_14 = arith.constant -4.480000e+02 : f32
    %cst_15 = arith.constant 4.480000e+02 : f32
    %79 = vector.broadcast %cst_14 : f32 to vector<8x128xf32>
    %80 = arith.maximumf %79, %76 : vector<8x128xf32>
    %81 = vector.broadcast %cst_15 : f32 to vector<8x128xf32>
    %82 = arith.minimumf %81, %80 : vector<8x128xf32>
    %83 = tpu.bitcast %82 : vector<8x128xf32> -> vector<8x128xi32>
    %c23_i32 = arith.constant 23 : i32
    %84 = vector.broadcast %c23_i32 : i32 to vector<8x128xi32>
    %85 = arith.shrsi %83, %84 : vector<8x128xi32>
    %c255_i32 = arith.constant 255 : i32
    %86 = vector.broadcast %c255_i32 : i32 to vector<8x128xi32>
    %87 = arith.andi %85, %86 : vector<8x128xi32>
    %c130_i32 = arith.constant 130 : i32
    %88 = vector.broadcast %c130_i32 : i32 to vector<8x128xi32>
    %89 = arith.subi %87, %88 : vector<8x128xi32>
    %c-10_i32 = arith.constant -10 : i32
    %90 = vector.broadcast %c-10_i32 : i32 to vector<8x128xi32>
    %91 = arith.maxsi %89, %90 : vector<8x128xi32>
    %c127_i32 = arith.constant 127 : i32
    %92 = vector.broadcast %c127_i32 : i32 to vector<8x128xi32>
    %93 = arith.addi %91, %92 : vector<8x128xi32>
    %c23_i32_16 = arith.constant 23 : i32
    %94 = vector.broadcast %c23_i32_16 : i32 to vector<8x128xi32>
    %95 = arith.shli %93, %94 : vector<8x128xi32>
    %96 = tpu.bitcast %95 : vector<8x128xi32> -> vector<8x128xf32>
    %c2130706432_i32 = arith.constant 2130706432 : i32
    %97 = vector.broadcast %c2130706432_i32 : i32 to vector<8x128xi32>
    %98 = arith.subi %97, %95 : vector<8x128xi32>
    %99 = tpu.bitcast %98 : vector<8x128xi32> -> vector<8x128xf32>
    %100 = arith.mulf %82, %99 : vector<8x128xf32>
    %101 = math.roundeven %100 : vector<8x128xf32>
    %102 = arith.mulf %101, %96 : vector<8x128xf32>
    %103 = arith.mulf %102, %78 : vector<8x128xf32>
    %c0_17 = arith.constant 0 : index
    %c0_18 = arith.constant 0 : index
    %104 = vector.load %arg2[%c0_17, %c0_18] : memref<8x128xf32, #tpu.memory_space<vmem>>, vector<8x128xf32>
    tpu.vector_store %arg2[%c0_17, %c0_18], %103 {strides = array<i32>} : memref<8x128xf32, #tpu.memory_space<vmem>>, vector<8x128xf32>,
    return
  }
  func.func @transform_0(%arg0: i32) -> (i32, i32) {
    %c0_i32 = arith.constant 0 : i32
    %c0_i32_0 = arith.constant 0 : i32
    return %arg0, %c0_i32 : i32, i32
  }
  func.func @transform_1(%arg0: i32) -> (i32, i32) {
    %c0_i32 = arith.constant 0 : i32
    %c0_i32_0 = arith.constant 0 : i32
    return %arg0, %c0_i32 : i32, i32
  }
}

</mosaic_0001>

<bundles_post_ra>
// kernel: tpu_custom_call.1
= control target key start
LH: loop header
LB: loop body
LE: loop exit
PB: predicated region body
PF: predicated region fallthrough
CT: control target
= control target key end

     0   :  { %6 = vsyncpa [#allocation3], 0  ;;  %s623_s0 = inlined_call_operand.hbm [shape: f32[16,128], index: 0, kind: input, shape index: {}]   ;;  %s624_s1 = inlined_call_operand.hbm [shape: f32[16,128], index: 1, kind: output, shape index: {}]  }
   0x1   :  { %8 = vsyncpa [#allocation3 + $0x1], 0 }
   0x2   :  { %9 = vsyncpa [#allocation4], 0 }
   0x3   :  { %11 = vsyncpa [#allocation4 + $0x1], 0  ;;  %s488_s6 = smov 0   ;;  %s490_s7 = smov 0  }
   0x4   :  { %s492_s8 = smov 0   ;;  %s494_s9 = smov 0  }
   0x5 LB: > { %s509_s10 = sadd.s32 4294967295, %s476_s9   ;;  %s310_s11 = sadd.s32 4294967294, %s476_s9   ;;  %s476_s9 = sphi %s494_s9, %s634_s9   ;;  %s472_s8 = sphi %s492_s8, %s633_s8   ;;  %s468_s7 = sphi %s490_s7, %s632_s7   ;;  %s464_s6 = sphi %s488_s6, %s631_s6  }
   0x6   : > { %s513_s12 = sadd.s32 1, %s476_s9   ;;  %s24_s13 = sadd.s32 1, %s472_s8 }
   0x7   : > { %s21_s14 = ssub.s32 %s476_s9, %s513_s12  ;;  %p31_p0 = scmp.ne.s32.totalorder %s472_s8, %s468_s7 }
   0x8   : > { %p22_p1 = scmp.eq.s32.totalorder %s21_s14, 0  ;;  %p32_p2 = scmp.eq.s32.totalorder %s476_s9, 0 }
   0x9   : > { %p37_p3 = scmp.ne.s32.totalorder %s468_s7, %s464_s6  ;;  %p38_p4 = scmp.eq.s32.totalorder %s509_s10, 0 }
   0xa   : > { %s525_s15 = scalar_select %p22_p1, %s472_s8, %s24_s13  }
   0xb   : > { %p527_p5 = por %p32_p2, %p31_p0  ;;  %p531_p6 = por %p38_p4, %p37_p3 }
   0xc   : > { %p61_p7 = scmp.eq.s32.totalorder %s509_s10, 1  ;;  %p67_p8 = scmp.eq.s32.totalorder %s310_s11, 1 }
   0xd   : > { %p344_p10 = scmp.lt.s32.totalorder %s476_s9, 2  ;;  %s87_s20 = sand.u32 1, %s472_s8  }
   0xe   : > { %p538_p11 = por %p61_p7, %p31_p0  ;;  %p542_p12 = por %p67_p8, %p37_p3 }
   0xf   : > { %s314_s21 = sshll.u32 %s476_s9, 3  ;;  %s313_s22 = sshll.u32 %s87_s20, 3 }
  0x10   : > { %s95_s25 = scalar_lea.hbm %s623_s0, %s314_s21  ;;  %s91_s27 = scalar_lea.vmem [#allocation2], %s313_s22 }
  0x11   : > { %s97_s26 = sshll.u32 %s95_s25, 4  ;;  %s99_s28 = sshll.u32 %s91_s27, 4  ;;  %s98_s26 = int_to_ptr.hbm [resolvable:$true] %s97_s26  ;;  %s100_s28 = int_to_ptr.vmem [resolvable:$true] %s99_s28 }
  0x12   : > { %p553_p13 = pnand %p344_p10, %p527_p5  ;;  %p315_p0 = scmp.ge.s32.totalorder %s476_s9, 1 }
  0x13   : > { %p104_p1 = scmp.lt.s32.totalorder %s476_s9, 3  ;;  %s88_s30 = scalar_lea.sflag [#allocation3], %s87_s20 }
  0x14   : > { %s380_s2 = sshra.s32 %s98_s26, 4  ;;  %p384_p3 = pneg %p553_p13  ;;  %s381_s2 = int_to_ptr.hbm [resolvable:$true] %s380_s2 }
  0x15   : > { %s382_s3 = scalar_lea.hbm %s381_s2, 8  ;;  %s387_s11 = scalar_lea.hbm %s623_s0, 16 }
  0x16   : > { %p383_p2 = scmp.ne.s32.totalorder %s381_s2, %s382_s3  ;;  %p388_p5 = scmp.lt.s32.totalorder %s381_s2, %s623_s0 }
  0x17   : > { %p389_p8 = scmp.lt.s32.totalorder %s387_s11, %s382_s3 }
  0x18   : > { %p385_p4 = pnand %p384_p3, %p383_p2 }
  0x19   : > { %p390_p10 = por %p389_p8, %p388_p5 }
  0x1a   : > { %p386_p7 = pneg %p385_p4 }
  0x1c   : > { %p391_p9 = pnand %p390_p10, %p386_p7 }
  0x1e   : > { %394 = shalt.err (!%p391_p9)
}
  0x1f   : > { %339 = dma.hbm_to_vmem [thread:$0]  (!%p553_p13), %s98_s26, 128, %s100_s28, %s88_s30  }
  0x20   : > { %p105_p2 = pnand %p315_p0, %p104_p1 }
  0x21   : > { %s574_s16 = sand.u32 (!%p105_p2), 1, %s468_s7  }
  0x22   : > { %108 = sbr.rel (%p105_p2) target bundleno = 235 (0xeb), region = 24  ;;  %s316_s20 = sshll.u32 (!%p105_p2), %s574_s16, 3 }
  0x23   : > { %s111_s21 = scalar_lea.sflag (!%p105_p2), [#allocation3], %s574_s16  ;;  %s114_s22 = scalar_lea.vmem (!%p105_p2), [#allocation2], %s316_s20 }
  0x27   : > { %455 = dma.done.wait (%p531_p6), %s111_s21, 128  }
  0x28   : > { %457 = vsyncadd (%p531_p6), %s111_s21, 4294967168  ;;  %v584_v0 = vld [vmem:[%s114_s22] sm:$0xff]  ;;  %vm139_vm0 = vcmask 130048   ;;  %vm151_vm1 = vcmask 392448   ;;  %vm163_vm2 = vcmask 654848   ;;  %vm145_vm3 = vcmask 261248  }
  0x29   : > { %v135_v1 = vand.u32 2147483647, %v584_v0  ;;  %vm157_vm4 = vcmask 523648   ;;  %vm169_vm5 = vcmask 786048   ;;  %vm175_vm6 = vcmask 917248   ;;  %s321_s17 = sshll.u32 %s509_s10, 3 }
  0x2a   : > { %vm181_vm7 = vcmask 1048448   ;;  %v136_v10 = vlaneseq  ;;  %s235_s25 = scalar_lea.hbm %s624_s1, %s321_s17  ;;  %s133_s26 = scalar_lea.vmem [#allocation5], %s316_s20 }
  0x2b   : > { %v140_v2 = vsel %vm139_vm0, %v135_v1, -inf  ;;  %v152_v3 = vsel %vm151_vm1, %v135_v1, -inf  ;;  %v164_v4 = vsel %vm163_vm2, %v135_v1, -inf  ;;  %v146_v5 = vsel %vm145_vm3, %v135_v1, -inf  ;;  %s237_s27 = sshll.u32 %s133_s26, 4  ;;  %s239_s28 = sshll.u32 %s235_s25, 4  ;;  %s238_s27 = int_to_ptr.vmem [resolvable:$true] %s237_s27  ;;  %s240_s28 = int_to_ptr.hbm [resolvable:$true] %s239_s28 }
  0x2c   : > { %141 = vmax.xlane.f32.xlu0 %v140_v2  ;;  %153 = vmax.xlane.f32.xlu1 %v152_v3  ;;  %v158_v6 = vsel %vm157_vm4, %v135_v1, -inf  ;;  %v170_v7 = vsel %vm169_vm5, %v135_v1, -inf  ;;  %v176_v8 = vsel %vm175_vm6, %v135_v1, -inf  ;;  %v182_v9 = vsel %vm181_vm7, %v135_v1, -inf  ;;  %s225_s10 = scalar_lea.sflag [#allocation4], %s574_s16  ;;  %s424_s29 = sshra.s32 %s240_s28, 4  ;;  %s425_s29 = int_to_ptr.hbm [resolvable:$true] %s424_s29 }
  0x2d   : > { %165 = vmax.xlane.f32.xlu2 %v164_v4  ;;  %v137_v11 = vand.u32 127, %v136_v10  ;;  %s426_s30 = scalar_lea.hbm %s425_s29, 8  ;;  %s430_s4 = scalar_lea.hbm %s624_s1, 16 }
  0x2e   : > { %p427_p6 = scmp.ne.s32.totalorder %s425_s29, %s426_s30  ;;  %p431_p0 = scmp.lt.s32.totalorder %s425_s29, %s624_s1 }
  0x2f   : > { %v138_v14 = vshra.s32 %v137_v11, 4  ;;  %p432_p1 = scmp.lt.s32.totalorder %s430_s4, %s426_s30 }
  0x30   : > { %p428_p9 = pnand %p427_p6, %p538_p11 }
  0x31   : > { %vm143_vm8 = vcmp.eq.s32.totalorder %v138_v14, 0  ;;  %vm149_vm9 = vcmp.eq.s32.totalorder %v138_v14, 1  ;;  %vm155_vm10 = vcmp.eq.s32.totalorder %v138_v14, 2  ;;  %vm161_vm11 = vcmp.eq.s32.totalorder %v138_v14, 3  ;;  %p433_p3 = por %p432_p1, %p431_p0 }
  0x32   : > { %vm167_vm12 = vcmp.eq.s32.totalorder %v138_v14, 4  ;;  %vm173_vm13 = vcmp.eq.s32.totalorder %v138_v14, 5  ;;  %vm179_vm14 = vcmp.eq.s32.totalorder %v138_v14, 6  ;;  %vm185_vm15 = vcmp.eq.s32.totalorder %v138_v14, 7  ;;  %p429_p13 = pneg %p428_p9 }
  0x34   : > { %147 = vmax.xlane.f32.xlu0 %v146_v5  ;;  %159 = vmax.xlane.f32.xlu1 %v158_v6  ;;  %p434_p4 = pnand %p433_p3, %p429_p13 }
  0x35   : > { %171 = vmax.xlane.f32.xlu2 %v170_v7 }
  0x3c   : > { %177 = vmax.xlane.f32.xlu0 %v176_v8  ;;  %183 = vmax.xlane.f32.xlu1 %v182_v9 }
  0x9f   : > { %v142_v12 = vpop.xlane.xlu0 %141  ;;  %v154_v13 = vpop.xlane.xlu1 %153 }
  0xa0   : > { %v166_v15 = vpop.xlane.xlu2 %165  ;;  %v144_v16 = vsel %vm143_vm8, %v142_v12, 0.0 }
  0xa7   : > { %v148_v17 = vpop.xlane.xlu0 %147  ;;  %v160_v18 = vpop.xlane.xlu1 %159 }
  0xa8   : > { %v150_v19 = vsel %vm149_vm9, %v148_v17, %v144_v16  ;;  %v172_v22 = vpop.xlane.xlu2 %171 }
  0xa9   : > { %v156_v20 = vsel %vm155_vm10, %v154_v13, %v150_v19 }
  0xaa   : > { %v162_v21 = vsel %vm161_vm11, %v160_v18, %v156_v20 }
  0xab   : > { %v168_v23 = vsel %vm167_vm12, %v166_v15, %v162_v21 }
  0xac   : > { %v174_v24 = vsel %vm173_vm13, %v172_v22, %v168_v23 }
  0xaf   : > { %v178_v25 = vpop.xlane.xlu0 %177  ;;  %v184_v26 = vpop.xlane.xlu1 %183 }
  0xb0   : > { %v180_v27 = vsel %vm179_vm14, %v178_v25, %v174_v24 }
  0xb1   : > { %v186_v28 = vsel %vm185_vm15, %v184_v26, %v180_v27 }
  0xb2   : > { %vm187_vm0 = vcmp.gt.f32.partialorder %v186_v28, 0.0  ;;  %v205_v58 = vmul.f32 0.002232143, %v186_v28 }
  0xb3   : > { %v188_v29 = vsel %vm187_vm0, %v186_v28, 1.0 }
  0xb4   : > { %378 = vrcp.f32 %v188_v29  ;;  %v200_v33 = vand.u32 2147483648, %v188_v29  ;;  %v198_v35 = vand.u32 2147483647, %v188_v29  ;;  %vm194_vm2 = vweird.f32 %v188_v29 }
  0xb6   : > { %v201_v37 = vor.u32 1.1754944e-38, %v200_v33  ;;  %vm199_vm4 = vcmp.eq.f32.partialorder %v198_v35, 8.507059e+37 }
  0xba   : > { %v379_v30 = vpop.eup %378 }
  0xbb   : > { %v190_v31 = vmul.f32 %v379_v30, %v188_v29  ;;  %vm195_vm1 = vweird.f32 %v379_v30 }
  0xbc   : > { %vm196_vm3 = vmor %vm194_vm2, %vm195_vm1 }
  0xbd   : > { %v191_v32 = vsub.f32 1.0, %v190_v31 }
  0xbf   : > { %v192_v34 = vmul.f32 %v379_v30, %v191_v32 }
  0xc1   : > { %v193_v36 = vadd.f32 %v379_v30, %v192_v34 }
  0xc3   : > { %v197_v38 = vsel %vm196_vm3, %v379_v30, %v193_v36 }
  0xc4   : > { %v202_v39 = vsel %vm199_vm4, %v201_v37, %v197_v38 }
  0xc5   : > { %v203_v40 = vmul.f32 448.0, %v202_v39 }
  0xc7   : > { %v204_v41 = vmul.f32 %v203_v40, %v584_v0 }
  0xc9   : > { %v318_v42 = vclamps-f32 %v204_v41, 448.0 }
  0xcb   : > { %v209_v43 = vshra.s32 %v318_v42, 23 }
  0xcd   : > { %v210_v44 = vand.u32 255, %v209_v43 }
  0xcf   : > { %v319_v45 = vadd.s32 4294967166, %v210_v44 }
  0xd1   : > { %vm212_vm5 = vcmp.gt.s32.totalorder %v319_v45, 4294967286 }
  0xd2   : > { %v213_v46 = vsel %vm212_vm5, %v319_v45, 4294967286 }
  0xd3   : > { %v214_v47 = vadd.s32 127, %v213_v46 }
  0xd5   : > { %v215_v48 = vshll.u32 %v214_v47, 23 }
  0xd7   : > { %v217_v49 = vsub.s32 2130706432, %v215_v48 }
  0xd9   : > { %v219_v50 = vmul.f32 %v318_v42, %v217_v49 }
  0xdb   : > { %v326_v51 = vcvt.f32.s32 %v219_v50  ;;  %v324_v53 = vand.u32 2147483647, %v219_v50  ;;  %v329_v55 = vand.u32 2147483648, %v219_v50 }
  0xdd   : > { %v327_v52 = vcvt.s32.f32 %v326_v51  ;;  %vm325_vm6 = vcmp.lt.f32.partialorder %v324_v53, 8388608.0 }
  0xdf   : > { %v328_v54 = vand.u32 2147483647, %v327_v52 }
  0xe1   : > { %v330_v56 = vor.u32 %v329_v55, %v328_v54 }
  0xe3   : > { %v331_v57 = vsel %vm325_vm6, %v330_v56, %v219_v50 }
  0xe4   : > { %v221_v59 = vmul.f32 %v331_v57, %v215_v48 }
  0xe6   : > { %v222_v60 = vmul.f32 %v221_v59, %v205_v58 }
  0xe8   : > { %223 = vst [vmem:[%s133_s26] sm:$0xff] %v222_v60 }
  0xe9   : > { %437 = shalt.err (!%p434_p4)
}
  0xea   : > { %334 = dma.vmem_to_hbm [thread:$0]  (%p538_p11), %s238_s27, 128, %s240_s28, %s225_s10  }
  0xeb PF: > { %s251_s13 = sand.u32 1, %s464_s6   ;;  %p630_p7 = scmp.ge.s32.totalorder %s476_s9, 2 }
  0xec   : > { %s252_s14 = scalar_lea.sflag [#allocation4], %s251_s13 }
  0xed   : > { %p341_p5 = pnand %p630_p7, %p542_p12 }
  0xef   : > { %p342_p8 = pneg %p341_p5 }
  0xf1   : > { %459 = dma.done.wait (%p342_p8), %s252_s14, 128  }
  0xf2   : > { %461 = vsyncadd (%p342_p8), %s252_s14, 4294967168  ;;  %p14_p10 = scmp.ge.s32.totalorder %s513_s12, 4   ;;  %s631_s6 = smov %s468_s7 }
  0xf3   : > { %s632_s7 = smov %s472_s8  ;;  %s633_s8 = smov %s525_s15 }
  0xf4   : > { %s634_s9 = smov %s513_s12  ;;  %16 = sbr.rel (!%p14_p10) target bundleno = 5 (0x5), region = 69 }
  0xf9   :  { %258 = vsyncpa [#allocation3], 1 }
  0xfa   :  { %260 = vsyncpa [#allocation3 + $0x1], 1 }
  0xfb   :  { %261 = vsyncpa [#allocation4], 1 }
  0xfc   :  { %263 = vsyncpa [#allocation4 + $0x1], 1 }

</bundles_post_ra>
